<compile_context>
chip_gen: v6e
topology: v6e:2x2x1
jax: 0.10.0
libtpu: 0.0.40
codegen_flags: <defaults>
</compile_context>

<pallas_src>
import functools

import jax
import jax.numpy as jnp
from jax import lax
from jax.experimental import pallas as pl
from jax.experimental.pallas import tpu as pltpu

EPS = 1e-5


# ----------------------------------------------------------------------------
# Kernels
# ----------------------------------------------------------------------------
def _proj_bn_kernel(x_ref, gamma_ref, beta_ref, o_ref, *, inv_count):
    """Fused single-pass kernel. Block spans the full (N, HW) extent, so the
    per-channel batch statistics computed here are exact."""
    xf = x_ref[...].astype(jnp.float32)                        # (N, CB, HWp)

    # One sweep: sum and sum-of-squares with f32 accumulation (no 'centered' temp).
    s1 = jnp.sum(xf, axis=(0, 2), keepdims=True)               # (1, CB, 1)
    s2 = jnp.sum(xf * xf, axis=(0, 2), keepdims=True)          # (1, CB, 1)
    mean = s1 * inv_count
    var = jnp.maximum(s2 * inv_count - mean * mean, 0.0)       # biased variance
    rstd = lax.rsqrt(var + EPS)

    # Fold normalization + per-(n,c) affine into one FMA per element.
    gamma = gamma_ref[...].astype(jnp.float32)                 # (N, CB, 1)
    beta = beta_ref[...].astype(jnp.float32)                   # (N, CB, 1)
    scale = gamma * rstd                                       # (N, CB, 1)
    shift = beta - scale * mean                                # (N, CB, 1)

    o_ref[...] = (xf * scale + shift).astype(o_ref.dtype)


def _stats_kernel(x_ref, sum_ref, sq_ref):
    """Two-pass fallback, pass 1: accumulate per-channel sum / sum-of-squares over an
    HW-blocked reduction grid axis (padded lanes are zero, so they don't perturb sums)."""
    @pl.when(pl.program_id(1) == 0)
    def _():
        sum_ref[...] = jnp.zeros_like(sum_ref)
        sq_ref[...] = jnp.zeros_like(sq_ref)

    xf = x_ref[...].astype(jnp.float32)                        # (N, CB, HWB)
    sum_ref[...] += jnp.sum(xf, axis=(0, 2), keepdims=True)[0]  # (CB, 1)
    sq_ref[...] += jnp.sum(xf * xf, axis=(0, 2), keepdims=True)[0]


def _apply_kernel(x_ref, scale_ref, shift_ref, o_ref):
    """Two-pass fallback, pass 2: out = x * scale + shift."""
    o_ref[...] = (x_ref[...].astype(jnp.float32) * scale_ref[...]
                  + shift_ref[...]).astype(o_ref.dtype)


# ----------------------------------------------------------------------------
# Tiling helpers
# ----------------------------------------------------------------------------
def _vmem_limits():
    """Generation-aware scoped-VMEM limit and tile budget (bytes)."""
    try:
        cap = int(pltpu.get_tpu_info().vmem_capacity_bytes)
    except Exception:
        cap = 64 << 20                                   # conservative (v7x per-TC)
    vmem_limit = min(int(cap * 0.75), 100 << 20)         # explicit scoped limit
    tile_budget = min(int(vmem_limit * 0.55), 48 << 20)  # blocks + temporaries
    return vmem_limit, tile_budget


def _per_channel_bytes(N, HWp, in_item, out_item):
    """Estimated VMEM bytes per channel of block, including double-buffering and
    in-kernel f32 temporaries."""
    bytes_in = N * HWp * in_item * 2           # x tile, double-buffered
    bytes_out = N * HWp * out_item * 2         # out tile, double-buffered
    tmp_factor = 1 if in_item >= 4 else 2      # f32 upcast + FMA result temporaries
    bytes_tmp = tmp_factor * N * HWp * 4
    bytes_affine = 2 * N * 128 * 4 * 2         # gamma+beta, lane-padded, double-buffered
    return bytes_in + bytes_out + bytes_tmp + bytes_affine


def _choose_c_block(C, per_channel_bytes, budget_bytes, sublane_step):
    """Largest channel block fitting the budget, preferring >=4 (then >=2, then even)
    grid steps so pipelining and v7x dual-TC sharding stay active.
    Returns None if even the smallest legal block does not fit (-> two-pass path)."""
    divisors = [d for d in range(1, C + 1) if C % d == 0]
    valid = [d for d in divisors if d % 8 == 0 or d == C]      # Mosaic sublane rule
    fitting = [d for d in valid if d * per_channel_bytes <= budget_bytes]
    if not fitting:
        return None

    def score(d):
        g = C // d
        return (g >= 4, g >= 2, g % 2 == 0, d % sublane_step == 0, d)

    return max(fitting, key=score)


# ----------------------------------------------------------------------------
# Two-pass fallback (large N*HW)
# ----------------------------------------------------------------------------
def _two_pass(x, gamma, beta, N, C, HWp, inv_count, out_dtype,
              vmem_limit, tile_budget):
    in_item = x.dtype.itemsize
    out_item = jnp.dtype(out_dtype).itemsize

    # Smallest legal channel block.
    cb_candidates = [d for d in range(8, C + 1, 8) if C % d == 0]
    cb = cb_candidates[0] if cb_candidates else C

    # Largest HW block (multiple of 128 dividing HWp) whose working set fits.
    lanes = HWp // 128
    hw_divs = sorted([128 * d for d in range(1, lanes + 1) if lanes % d == 0],
                     reverse=True)

    def fits(hwb):
        per_step = (N * cb * hwb * (in_item * 2 + out_item * 2)
                    + 2 * N * cb * hwb * 4)          # f32 temporaries
        return per_step <= tile_budget

    hwb = next((h for h in hw_divs if fits(h)), hw_divs[-1])
    grid = (C // cb, HWp // hwb)

    # Pass 1: per-channel sum / sum-of-squares (reduction axis last, "arbitrary").
    sums, sqs = pl.pallas_call(
        _stats_kernel,
        out_shape=(jax.ShapeDtypeStruct((C, 1), jnp.float32),
                   jax.ShapeDtypeStruct((C, 1), jnp.float32)),
        grid_spec=pltpu.PrefetchScalarGridSpec(
            num_scalar_prefetch=0,
            grid=grid,
            in_specs=[pl.BlockSpec((N, cb, hwb), lambda c, h: (0, c, h))],
            out_specs=(pl.BlockSpec((cb, 1), lambda c, h: (c, 0)),
                       pl.BlockSpec((cb, 1), lambda c, h: (c, 0))),
        ),
        compiler_params=pltpu.CompilerParams(
            dimension_semantics=("parallel", "arbitrary"),
            vmem_limit_bytes=vmem_limit),
    )(x)

    mean = sums[:, 0] * inv_count                              # (C,)
    var = jnp.maximum(sqs[:, 0] * inv_count - mean * mean, 0.0)
    rstd = lax.rsqrt(var + EPS)
    scale = gamma * rstd[None, :]                              # (N, C)
    shift = beta - scale * mean[None, :]

    # Pass 2: lane-dense elementwise apply.
    out = pl.pallas_call(
        _apply_kernel,
        out_shape=jax.ShapeDtypeStruct((N, C, HWp), out_dtype),
        grid_spec=pltpu.PrefetchScalarGridSpec(
            num_scalar_prefetch=0,
            grid=grid,
            in_specs=[pl.BlockSpec((N, cb, hwb), lambda c, h: (0, c, h)),
                      pl.BlockSpec((N, cb, 1), lambda c, h: (0, c, 0)),
                      pl.BlockSpec((N, cb, 1), lambda c, h: (0, c, 0))],
            out_specs=pl.BlockSpec((N, cb, hwb), lambda c, h: (0, c, h)),
        ),
        compiler_params=pltpu.CompilerParams(
            dimension_semantics=("parallel", "parallel"),
            vmem_limit_bytes=vmem_limit),
    )(x, scale.reshape(N, C, 1), shift.reshape(N, C, 1))
    return out


# ----------------------------------------------------------------------------
# Public wrapper
# ----------------------------------------------------------------------------
def projection_batch_norm_2d(x_nchw, emb, weight, bias, *, c_block=None):
    """x_nchw: (N,C,H,W), emb: (N,E), weight: (2C,E) [torch Linear layout], bias: (2C,)."""
    N, C, H, W = x_nchw.shape
    HW = H * W
    out_dtype = x_nchw.dtype

    # Tiny projection hoisted out of the kernel (would waste MXU tiles and be
    # recomputed every grid step otherwise).
    gb = (emb.astype(jnp.float32) @ weight.astype(jnp.float32).T
          + bias.astype(jnp.float32))                          # (N, 2C)
    gamma = gb[:, :C]                                          # (N, C)
    beta = gb[:, C:]                                           # (N, C)

    # Contiguous reshape only — no HBM transposes. Pad the lane dim to a multiple
    # of 128 so stores are unmasked / lane-dense; the zero padding does not affect
    # the statistics because sums are divided by the real element count.
    x = x_nchw.reshape(N, C, HW)
    HWp = ((HW + 127) // 128) * 128
    if HWp != HW:
        x = jnp.pad(x, ((0, 0), (0, 0), (0, HWp - HW)))

    inv_count = 1.0 / float(N * HW)

    vmem_limit, tile_budget = _vmem_limits()
    in_item = x.dtype.itemsize
    out_item = jnp.dtype(out_dtype).itemsize
    per_ch = _per_channel_bytes(N, HWp, in_item, out_item)
    sublane_step = max(8, 32 // max(1, in_item))   # 8 f32, 16 bf16, 32 int8/fp8

    if c_block is None:
        c_block = _choose_c_block(C, per_ch, tile_budget, sublane_step)

    if c_block is not None:
        # Single fused pass; every block spans the full (N, HWp) extent (required
        # for exact in-block batch statistics).
        out = pl.pallas_call(
            functools.partial(_proj_bn_kernel, inv_count=inv_count),
            out_shape=jax.ShapeDtypeStruct((N, C, HWp), out_dtype),
            grid_spec=pltpu.PrefetchScalarGridSpec(
                num_scalar_prefetch=0,
                grid=(C // c_block,),
                in_specs=[
                    pl.BlockSpec((N, c_block, HWp), lambda c: (0, c, 0)),
                    pl.BlockSpec((N, c_block, 1), lambda c: (0, c, 0)),
                    pl.BlockSpec((N, c_block, 1), lambda c: (0, c, 0)),
                ],
                out_specs=pl.BlockSpec((N, c_block, HWp), lambda c: (0, c, 0)),
            ),
            compiler_params=pltpu.CompilerParams(
                dimension_semantics=("parallel",),
                vmem_limit_bytes=vmem_limit),
        )(x, gamma.reshape(N, C, 1), beta.reshape(N, C, 1))
    else:
        # Even the smallest channel block does not fit VMEM: two-pass fallback.
        out = _two_pass(x, gamma, beta, N, C, HWp, inv_count, out_dtype,
                        vmem_limit, tile_budget)

    if HWp != HW:
        out = out[:, :, :HW]
    return out.reshape(N, C, H, W)


# ----------------------------------------------------------------------------
# Reference + test
# ----------------------------------------------------------------------------
def _reference(x, emb, weight, bias):
    C = x.shape[1]
    mean = jnp.mean(x, axis=(0, 2, 3), keepdims=True)
    var = jnp.mean((x - mean) ** 2, axis=(0, 2, 3), keepdims=True)
    out = (x - mean) / jnp.sqrt(var + EPS)
    gb = emb @ weight.T + bias
    gamma, beta = gb[:, :C], gb[:, C:]
    return gamma[:, :, None, None] * out + beta[:, :, None, None]


if __name__ == "__main__":
    N, C, H, W = 2, 4, 16, 16
    E = 8

    key = jax.random.PRNGKey(0)
    kx, kemb, kbias = jax.random.split(key, 3)

    x = jax.random.normal(kx, (N, C, H, W), dtype=jnp.float32)
    emb = jax.random.normal(kemb, (N, E), dtype=jnp.float32)

    # Linear(E, 2C): torch weight shape (2C, E).
    # Module __init__ overwrites: weight[:, :C] = 1, weight[:, C:] = 0.
    weight = jnp.concatenate(
        [jnp.ones((2 * C, C), jnp.float32),
         jnp.zeros((2 * C, E - C), jnp.float32)], axis=1)
    # bias: deterministic stand-in for torch's default uniform init
    bias = jax.random.uniform(kbias, (2 * C,), jnp.float32,
                              minval=-1.0 / jnp.sqrt(E), maxval=1.0 / jnp.sqrt(E))

    out = projection_batch_norm_2d(x, emb, weight, bias)
    out = jax.block_until_ready(out)

    ref = _reference(x, emb, weight, bias)
    assert out.shape == (N, C, H, W)
    assert jnp.allclose(out, ref, atol=1e-4, rtol=1e-4), "mismatch vs reference"

    print("KERNEL_OK")
</pallas_src>

<mosaic_0001>
module attributes {stable_mosaic.version = 11 : i64} {
  func.func @_proj_bn_kernel(%arg0: i32, %arg1: memref<2x4x256xf32, #tpu.memory_space<vmem>>, %arg2: memref<2x4x1xf32, #tpu.memory_space<vmem>>, %arg3: memref<2x4x1xf32, #tpu.memory_space<vmem>>, %arg4: memref<2x4x256xf32, #tpu.memory_space<vmem>>) attributes {dimension_semantics = [#tpu.dimension_semantics<parallel>], iteration_bounds = array<i64: 1>, scalar_prefetch = 0 : i64, scratch_operands = 0 : i64, tpu.core_type = #tpu.core_type<tc>, window_params = [{transform_indices = @transform_0, window_bounds = array<i64: 2, 4, 256>}, {transform_indices = @transform_1, window_bounds = array<i64: 2, 4, 1>}, {transform_indices = @transform_2, window_bounds = array<i64: 2, 4, 1>}, {transform_indices = @transform_3, window_bounds = array<i64: 2, 4, 256>}]} {
    %c0 = arith.constant 0 : index
    %c0_0 = arith.constant 0 : index
    %c0_1 = arith.constant 0 : index
    %0 = vector.load %arg1[%c0, %c0_0, %c0_1] : memref<2x4x256xf32, #tpu.memory_space<vmem>>, vector<2x4x256xf32>
    %cst = arith.constant dense<0.000000e+00> : vector<4xf32>
    %1 = vector.multi_reduction <add>, %0, %cst [0, 2] : vector<2x4x256xf32> to vector<4xf32>
    %2 = vector.shape_cast %1 : vector<4xf32> to vector<1x4x1xf32>
    %3 = arith.mulf %0, %0 : vector<2x4x256xf32>
    %cst_2 = arith.constant dense<0.000000e+00> : vector<4xf32>
    %4 = vector.multi_reduction <add>, %3, %cst_2 [0, 2] : vector<2x4x256xf32> to vector<4xf32>
    %5 = vector.shape_cast %4 : vector<4xf32> to vector<1x4x1xf32>
    %cst_3 = arith.constant 0.001953125 : f32
    %6 = vector.broadcast %cst_3 : f32 to vector<1x4x1xf32>
    %7 = arith.mulf %2, %6 : vector<1x4x1xf32>
    %cst_4 = arith.constant 0.001953125 : f32
    %8 = vector.broadcast %cst_4 : f32 to vector<1x4x1xf32>
    %9 = arith.mulf %5, %8 : vector<1x4x1xf32>
    %10 = arith.mulf %7, %7 : vector<1x4x1xf32>
    %11 = arith.subf %9, %10 : vector<1x4x1xf32>
    %cst_5 = arith.constant 0.000000e+00 : f32
    %12 = vector.broadcast %cst_5 : f32 to vector<1x4x1xf32>
    %13 = arith.maximumf %11, %12 : vector<1x4x1xf32>
    %cst_6 = arith.constant 9.99999974E-6 : f32
    %14 = vector.broadcast %cst_6 : f32 to vector<1x4x1xf32>
    %15 = arith.addf %13, %14 : vector<1x4x1xf32>
    %16 = math.rsqrt %15 : vector<1x4x1xf32>
    %c0_7 = arith.constant 0 : index
    %c0_8 = arith.constant 0 : index
    %c0_9 = arith.constant 0 : index
    %17 = vector.load %arg2[%c0_7, %c0_8, %c0_9] : memref<2x4x1xf32, #tpu.memory_space<vmem>>, vector<2x4x1xf32>
    %c0_10 = arith.constant 0 : index
    %c0_11 = arith.constant 0 : index
    %c0_12 = arith.constant 0 : index
    %18 = vector.load %arg3[%c0_10, %c0_11, %c0_12] : memref<2x4x1xf32, #tpu.memory_space<vmem>>, vector<2x4x1xf32>
    %19 = vector.broadcast %16 : vector<1x4x1xf32> to vector<2x4x1xf32>
    %20 = arith.mulf %17, %19 : vector<2x4x1xf32>
    %21 = vector.broadcast %7 : vector<1x4x1xf32> to vector<2x4x1xf32>
    %22 = arith.mulf %20, %21 : vector<2x4x1xf32>
    %23 = arith.subf %18, %22 : vector<2x4x1xf32>
    %24 = vector.broadcast %20 : vector<2x4x1xf32> to vector<2x4x256xf32>
    %25 = arith.mulf %0, %24 : vector<2x4x256xf32>
    %26 = vector.broadcast %23 : vector<2x4x1xf32> to vector<2x4x256xf32>
    %27 = arith.addf %25, %26 : vector<2x4x256xf32>
    %c0_13 = arith.constant 0 : index
    %c0_14 = arith.constant 0 : index
    %c0_15 = arith.constant 0 : index
    %28 = vector.load %arg4[%c0_13, %c0_14, %c0_15] : memref<2x4x256xf32, #tpu.memory_space<vmem>>, vector<2x4x256xf32>
    tpu.vector_store %arg4[%c0_13, %c0_14, %c0_15], %27 {strides = array<i32>} : memref<2x4x256xf32, #tpu.memory_space<vmem>>, vector<2x4x256xf32>,
    return
  }
  func.func @transform_0(%arg0: i32) -> (i32, i32, i32) {
    %c0_i32 = arith.constant 0 : i32
    %c0_i32_0 = arith.constant 0 : i32
    %c0_i32_1 = arith.constant 0 : i32
    return %c0_i32, %arg0, %c0_i32_0 : i32, i32, i32
  }
  func.func @transform_1(%arg0: i32) -> (i32, i32, i32) {
    %c0_i32 = arith.constant 0 : i32
    %c0_i32_0 = arith.constant 0 : i32
    %c0_i32_1 = arith.constant 0 : i32
    return %c0_i32, %arg0, %c0_i32_0 : i32, i32, i32
  }
  func.func @transform_2(%arg0: i32) -> (i32, i32, i32) {
    %c0_i32 = arith.constant 0 : i32
    %c0_i32_0 = arith.constant 0 : i32
    %c0_i32_1 = arith.constant 0 : i32
    return %c0_i32, %arg0, %c0_i32_0 : i32, i32, i32
  }
  func.func @transform_3(%arg0: i32) -> (i32, i32, i32) {
    %c0_i32 = arith.constant 0 : i32
    %c0_i32_0 = arith.constant 0 : i32
    %c0_i32_1 = arith.constant 0 : i32
    return %c0_i32, %arg0, %c0_i32_0 : i32, i32, i32
  }
}

</mosaic_0001>

<bundles_post_ra>
// kernel: tpu_custom_call.1
= control target key start
LH: loop header
LB: loop body
LE: loop exit
PB: predicated region body
PF: predicated region fallthrough
CT: control target
= control target key end

     0   :  { %vm23_vm0 = vcmask 1043456   ;;  %s240_s0 = inlined_call_operand.vmem [shape: f32[2,4,256], index: 0, kind: input, shape index: {}]   ;;  %s241_s1 = inlined_call_operand.vmem [shape: f32[2,4,1], index: 1, kind: input, shape index: {}]   ;;  %s242_s2 = inlined_call_operand.vmem [shape: f32[2,4,1], index: 2, kind: input, shape index: {}]   ;;  %s243_s3 = inlined_call_operand.hbm [shape: f32[2,4,256], index: 3, kind: output, shape index: {}]  }
   0x1   :  { %v198_v0 = vld [vmem:[%s240_s0] sm:$0xff]  ;;  %v203_v1 = vld [vmem:[%s240_s0 + $0x8] sm:$0xff] }
   0x2   :  { %8 = vsyncpa [#allocation3], 0  ;;  %v19_v2 = vcombine.high %v198_v0, %v198_v0  ;;  %v20_v3 = vcombine.high %v203_v1, %v203_v1  ;;  %v24_v4 = vsel %vm23_vm0, %v198_v0, 0.0  ;;  %v33_v5 = vmul.f32 %v198_v0, %v198_v0  ;;  %v57_v31 = vld [vmem:[%s241_s1] sm:$0xf] }
   0x3   :  { %v34_v6 = vmul.f32 %v203_v1, %v203_v1  ;;  %v27_v8 = vsel %vm23_vm0, %v203_v1, 0.0  ;;  %v170_v22 = vmov 0   ;;  %v58_v32 = vld [vmem:[%s241_s1 + $0x4] sm:$0xf]  ;;  %v59_v36 = vld [vmem:[%s242_s2] sm:$0xf]  ;;  %v78_v44 = vlaneseq }
   0x4   :  { %v25_v7 = vsel %vm23_vm0, %v19_v2, 0.0  ;;  %v37_v10 = vcombine.high %v33_v5, %v33_v5  ;;  %v41_v12 = vsel %vm23_vm0, %v33_v5, 0.0  ;;  %v29_v13 = vsel %vm23_vm0, %v20_v3, 0.0  ;;  %142 = vset.pattern.permute.xlu1 %v170_v22  ;;  %143 = vset.pattern.permute.xlu0 %v170_v22  ;;  %v60_v40 = vld [vmem:[%s242_s2 + $0x4] sm:$0xf]  ;;  %s172_s1 = smov [#allocation2]  }
   0x5   :  { %v26_v9 = vadd.f32 %v25_v7, %v24_v4  ;;  %v38_v11 = vcombine.high %v34_v6, %v34_v6  ;;  %v44_v16 = vsel %vm23_vm0, %v34_v6, 0.0  ;;  %v171_v42 = vmov 839922192   ;;  %s126_s2 = sshll.u32 %s172_s1, 4  ;;  %s127_s2 = int_to_ptr.vmem [resolvable:$true] %s126_s2 }
   0x6   :  { %v42_v15 = vsel %vm23_vm0, %v37_v10, 0.0  ;;  %v76_v43 = vunpack.c.l.s4 %v171_v42  ;;  %v79_v46 = vshrl.u32 %v78_v44, 7  ;;  %s148_s23 = scalar_lea.vmem %s127_s2, 256  ;;  %p153_p1 = scmp.lt.s32.totalorder %s127_s2, %s127_s2 }
   0x7   :  { %v28_v14 = vadd.f32 %v27_v8, %v26_v9  ;;  %v43_v17 = vadd.f32 %v42_v15, %v41_v12  ;;  %v46_v19 = vsel %vm23_vm0, %v38_v11, 0.0  ;;  %p149_p0 = scmp.ne.s32.totalorder %s127_s2, %s148_s23  ;;  %p154_p2 = scmp.lt.s32.totalorder %s148_s23, %s148_s23 }
   0x8   :  { %v77_v45 = vunpack.c.0.s8 %v76_v43 }
   0x9   :  { %v30_v18 = vadd.f32 %v29_v13, %v28_v14  ;;  %v45_v20 = vadd.f32 %v44_v16, %v43_v17  ;;  %p155_p3 = por %p154_p2, %p153_p1 }
   0xa   :  { %v80_v47 = vsub.s32 %v77_v45, %v79_v46 }
   0xb   :  { %31 = vadd.xlane.f32.xlu0 %v30_v18  ;;  %v47_v21 = vadd.f32 %v46_v19, %v45_v20  ;;  %p156_p4 = pnand %p155_p3, %p149_p0 }
   0xf   :  { %48 = vadd.xlane.f32.xlu0 %v47_v21 }
  0x94   :  { %v32_v23 = vpop.xlane.xlu0 %31 }
  0x95   :  { %v50_v24 = vmul.f32 0.001953125, %v32_v23 }
  0x97   :  { %v52_v26 = vmul.f32 %v50_v24, %v50_v24 }
  0x98   :  { %v49_v25 = vpop.xlane.xlu0 %48 }
  0x99   :  { %v51_v27 = vmul.f32 0.001953125, %v49_v25 }
  0x9b   :  { %v53_v28 = vsub.f32 %v51_v27, %v52_v26 }
  0x9d   :  { %v54_v29 = vmax.f32 %v53_v28, 0.0 }
  0x9f   :  { %v55_v30 = vadd.f32 1e-05, %v54_v29 }
  0xa1   :  { %146 = vrsqrt.f32 %v55_v30 }
  0xae   :  { %v147_v33 = vpop.eup %146 }
  0xaf   :  { %v61_v34 = vmul.f32 %v147_v33, %v57_v31  ;;  %v62_v35 = vmul.f32 %v147_v33, %v58_v32 }
  0xb1   :  { %69 = vperm.xlu1 %142, %v61_v34   ;;  %v63_v37 = vmul.f32 %v61_v34, %v50_v24  ;;  %v64_v39 = vmul.f32 %v62_v35, %v50_v24 }
  0xb3   :  { %v65_v38 = vsub.f32 %v59_v36, %v63_v37  ;;  %v66_v41 = vsub.f32 %v60_v40, %v64_v39 }
  0xb5   :  { %73 = vperm.xlu1 %142, %v62_v35   ;;  %95 = vperm.xlu0 %143, %v65_v38  }
  0xb9   :  { %99 = vperm.xlu1 %142, %v66_v41  }
 0x12c   :  { %v70_v48 = vpop.permute.xlu1 %69 }
 0x12d   :  { %v81_v49 = vrot.slane %v70_v48, %v80_v47 }
 0x12f   :  { %v91_v52 = vmul.f32 %v81_v49, %v198_v0 }
 0x130   :  { %v74_v50 = vpop.permute.xlu1 %73  ;;  %v96_v51 = vpop.permute.xlu0 %95 }
 0x131   :  { %v88_v53 = vrot.slane %v74_v50, %v80_v47  ;;  %v107_v54 = vrot.slane %v96_v51, %v80_v47 }
 0x133   :  { %v117_v55 = vadd.f32 %v107_v54, %v91_v52  ;;  %v92_v57 = vmul.f32 %v88_v53, %v203_v1 }
 0x134   :  { %v100_v56 = vpop.permute.xlu1 %99 }
 0x135   :  { %119 = vst [vmem:[#allocation2] sm:$0xff] %v117_v55  ;;  %v114_v58 = vrot.slane %v100_v56, %v80_v47 }
 0x137   :  { %v118_v59 = vadd.f32 %v114_v58, %v92_v57 }
 0x139   :  { %120 = vst [vmem:[#allocation2 + $0x8] sm:$0xff] %v118_v59 }
 0x13a   :  { %159 = shalt.err (!%p156_p4)
}
 0x13b   :  { %s173_s24 = smov 128   ;;  %s174_s25 = smov 8  }
 0x13c   :  { %132 = dma.vmem_to_hbm [thread:$0]  %s127_s2, 256, %s243_s3, [#allocation3], %s173_s24, %s173_s24, %s174_s25  }
 0x13d   :  { %168 = dma.done.wait [#allocation3], 256  }
 0x13e   :  { %169 = vsyncadd [#allocation3], 4294967040 }
 0x13f   :  { %136 = vsyncpa [#allocation3], 1 }

</bundles_post_ra>
